<compile_context>
chip_gen: v6e
topology: v6e:2x2x1
jax: 0.10.0
libtpu: 0.0.40
codegen_flags: <defaults>
</compile_context>

<pallas_src>
import functools

import jax
import jax.numpy as jnp
from jax.experimental import pallas as pl
from jax.experimental.pallas import tpu as pltpu

_LANES = 128
_SUBLANES = 8


def _project3d_kernel(p_ref, pts_ref, out_ref, *, eps):
    """One (batch, spatial-tile) grid step.

    p_ref  : (B, 12) f32 in SMEM.  Row-major folded 3x4 projection per batch:
             P'[0,:] = 2/(W-1) * (K@T)[0,:], P'[1,:] = 2/(H-1) * (K@T)[1,:],
             P'[2,:] = (K@T)[2,:].
    pts_ref: (1, 4, TS, 128) homogeneous points, spatial dim split into
             sublanes x lanes (full vreg occupancy).
    out_ref: (1, 2, TS, 128) normalized pixel coords (plane 0 = x, 1 = y).
    """
    b = pl.program_id(0)
    pts = pts_ref[0].astype(jnp.float32)          # (4, TS, 128)

    def cam_row(i):
        # scalar (SMEM) x vector FMAs on the VPU; no MXU involvement.
        return (p_ref[b, 4 * i + 0] * pts[0]
                + p_ref[b, 4 * i + 1] * pts[1]
                + p_ref[b, 4 * i + 2] * pts[2]
                + p_ref[b, 4 * i + 3] * pts[3])   # (TS, 128)

    # Exact divide on purpose: approx reciprocal (~2^-13 rel err) can exceed
    # the tolerance for border pixels.
    inv_z = 1.0 / (cam_row(2) + eps)
    out_ref[0, 0] = (cam_row(0) * inv_z - 1.0).astype(out_ref.dtype)
    out_ref[0, 1] = (cam_row(1) * inv_z - 1.0).astype(out_ref.dtype)


def _pick_tile_sublanes(s, batch, cap_sublanes=512):
    """Spatial tile size in 128-lane rows.  `s` must be a multiple of 8.

    cap 512 rows == 64K points == 1 MiB of f32 points per step: large enough
    to amortize per-grid-step overhead, small enough that double-buffered
    points + output tiles (~3 MiB) fit every generation's scoped VMEM.
    """
    ts = min(s, cap_sublanes)
    ts -= ts % _SUBLANES
    while s % ts:
        ts -= _SUBLANES
    # Keep a few total grid steps for the software pipeline / v7x's two TCs.
    while batch * (s // ts) < 4 and ts % (2 * _SUBLANES) == 0:
        ts //= 2
    return ts


def project_3d_planar(points, K, T, height, width, eps=1e-7):
    """points: (B, 4, H*W); K, T: (B, 4, 4).
    Returns planar (B, 2, H*W) normalized pixel coords (row 0 = x, row 1 = y)."""
    B, four, HW = points.shape
    assert four == 4 and HW == height * width

    # Fold K@T and the pixel normalization into one (B, 3, 4) matrix, computed
    # once outside the kernel.
    P = jnp.matmul(K.astype(jnp.float32), T.astype(jnp.float32))[:, :3, :]
    scale = jnp.array([2.0 / (width - 1), 2.0 / (height - 1), 1.0],
                      jnp.float32).reshape(1, 3, 1)
    p_flat = (P * scale).reshape(B, 12)

    # Pad H*W to a multiple of 8*128 so every block is an unmasked (TS, 128)
    # tile (zero-padded points project to finite values and are sliced off).
    tile = _SUBLANES * _LANES
    hw_p = ((HW + tile - 1) // tile) * tile
    if hw_p != HW:
        points = jnp.pad(points, ((0, 0), (0, 0), (0, hw_p - HW)))
    s = hw_p // _LANES                         # spatial rows of 128 points
    pts4d = points.reshape(B, 4, s, _LANES)    # free row-major reshape

    ts = _pick_tile_sublanes(s, B)
    grid = (B, s // ts)

    out = pl.pallas_call(
        functools.partial(_project3d_kernel, eps=float(eps)),
        out_shape=jax.ShapeDtypeStruct((B, 2, s, _LANES), points.dtype),
        grid_spec=pltpu.PrefetchScalarGridSpec(
            num_scalar_prefetch=0,
            grid=grid,
            in_specs=[
                # Folded projection rows: tiny, read as scalars from SMEM.
                pl.BlockSpec(memory_space=pltpu.MemorySpace.SMEM),
                # Points: lane-dense (1, 4, TS, 128) tiles of H*W.
                pl.BlockSpec((1, 4, ts, _LANES), lambda b, j: (b, 0, j, 0)),
            ],
            out_specs=pl.BlockSpec((1, 2, ts, _LANES),
                                   lambda b, j: (b, 0, j, 0)),
        ),
        compiler_params=pltpu.CompilerParams(
            dimension_semantics=("parallel", "parallel"),
        ),
    )(p_flat, pts4d)

    out = out.reshape(B, 2, hw_p)              # free row-major reshape
    if hw_p != HW:
        out = out[:, :, :HW]
    return out


def project_3d_pallas(points, K, T, height, width, eps=1e-7):
    """Exact Project3D.forward semantics: returns (B, H, W, 2)."""
    B = points.shape[0]
    planar = project_3d_planar(points, K, T, height, width, eps)
    # TODO(synk): in a real pipeline, feed the planar (B, 2, H*W) output
    # straight into the grid_sample consumer; the transpose below re-touches
    # the whole result in HBM only to match PyTorch's (B, H, W, 2) layout.
    return jnp.transpose(planar.reshape(B, 2, height, width), (0, 2, 3, 1))


if __name__ == "__main__":
    key = jax.random.PRNGKey(0)
    k_xy, k_z, k_t = jax.random.split(key, 3)

    B, H, W = 2, 16, 16
    HW = H * W
    eps = 1e-7

    # Homogeneous 3D points with positive depth (like backprojected depth).
    z = jax.random.uniform(k_z, (B, 1, HW), jnp.float32, 1.0, 5.0)
    xy = jax.random.uniform(k_xy, (B, 2, HW), jnp.float32, -1.0, 1.0) * z
    ones = jnp.ones((B, 1, HW), jnp.float32)
    points = jnp.concatenate([xy, z, ones], axis=1)          # (B, 4, HW)

    # Plausible intrinsics and a near-identity pose.
    K = jnp.array(
        [[0.58 * W, 0.0, 0.5 * W, 0.0],
         [0.0, 1.92 * H, 0.5 * H, 0.0],
         [0.0, 0.0, 1.0, 0.0],
         [0.0, 0.0, 0.0, 1.0]],
        jnp.float32,
    )
    K = jnp.broadcast_to(K, (B, 4, 4))
    T = jnp.broadcast_to(jnp.eye(4, dtype=jnp.float32), (B, 4, 4))
    T = T.at[:, :3, 3].set(jax.random.normal(k_t, (B, 3), jnp.float32) * 0.05)

    out = project_3d_pallas(points, K, T, H, W, eps=eps)
    out = jax.block_until_ready(out)

    # Pure-JAX reference mirroring the PyTorch forward.
    P = jnp.matmul(K, T)[:, :3, :]
    cam = jnp.matmul(P, points)
    pix = cam[:, :2, :] / (cam[:, 2:3, :] + eps)
    pix = jnp.transpose(pix.reshape(B, 2, H, W), (0, 2, 3, 1))
    pix = jnp.stack([pix[..., 0] / (W - 1), pix[..., 1] / (H - 1)], axis=-1)
    ref = (pix - 0.5) * 2.0

    assert out.shape == (B, H, W, 2)
    assert jnp.allclose(out, ref, atol=1e-4, rtol=1e-4)

    print("KERNEL_OK")
</pallas_src>

<mosaic_0001>
module attributes {stable_mosaic.version = 11 : i64} {
  func.func @_project3d_kernel(%arg0: i32, %arg1: i32, %arg2: memref<2x12xf32, #tpu.memory_space<smem>>, %arg3: memref<1x4x8x128xf32, #tpu.memory_space<vmem>>, %arg4: memref<1x2x8x128xf32, #tpu.memory_space<vmem>>) attributes {dimension_semantics = [#tpu.dimension_semantics<parallel>, #tpu.dimension_semantics<parallel>], iteration_bounds = array<i64: 2, 1>, scalar_prefetch = 0 : i64, scratch_operands = 0 : i64, tpu.core_type = #tpu.core_type<tc>, window_params = [{transform_indices = @transform_0, window_bounds = array<i64: 2, 12>}, {transform_indices = @transform_1, window_bounds = array<i64: 1, 4, 8, 128>}, {transform_indices = @transform_2, window_bounds = array<i64: 1, 2, 8, 128>}]} {
    %c0 = arith.constant 0 : index
    %c0_0 = arith.constant 0 : index
    %c0_1 = arith.constant 0 : index
    %c0_2 = arith.constant 0 : index
    %0 = vector.load %arg3[%c0, %c0_0, %c0_1, %c0_2] : memref<1x4x8x128xf32, #tpu.memory_space<vmem>>, vector<1x4x8x128xf32>
    %1 = vector.shape_cast %0 : vector<1x4x8x128xf32> to vector<4x8x128xf32>
    %2 = arith.index_cast %arg0 : i32 to index
    %c8 = arith.constant 8 : index
    %3 = memref.load %arg2[%2, %c8] : memref<2x12xf32, #tpu.memory_space<smem>>
    %4 = vector.extract_strided_slice %1 {offsets = [0, 0, 0], sizes = [1, 8, 128], strides = [1, 1, 1]} : vector<4x8x128xf32> to vector<1x8x128xf32>
    %5 = vector.shape_cast %4 : vector<1x8x128xf32> to vector<8x128xf32>
    %6 = vector.broadcast %3 : f32 to vector<8x128xf32>
    %7 = arith.mulf %6, %5 : vector<8x128xf32>
    %8 = arith.index_cast %arg0 : i32 to index
    %c9 = arith.constant 9 : index
    %9 = memref.load %arg2[%8, %c9] : memref<2x12xf32, #tpu.memory_space<smem>>
    %10 = vector.extract_strided_slice %1 {offsets = [1, 0, 0], sizes = [1, 8, 128], strides = [1, 1, 1]} : vector<4x8x128xf32> to vector<1x8x128xf32>
    %11 = vector.shape_cast %10 : vector<1x8x128xf32> to vector<8x128xf32>
    %12 = vector.broadcast %9 : f32 to vector<8x128xf32>
    %13 = arith.mulf %12, %11 : vector<8x128xf32>
    %14 = arith.addf %7, %13 : vector<8x128xf32>
    %15 = arith.index_cast %arg0 : i32 to index
    %c10 = arith.constant 10 : index
    %16 = memref.load %arg2[%15, %c10] : memref<2x12xf32, #tpu.memory_space<smem>>
    %17 = vector.extract_strided_slice %1 {offsets = [2, 0, 0], sizes = [1, 8, 128], strides = [1, 1, 1]} : vector<4x8x128xf32> to vector<1x8x128xf32>
    %18 = vector.shape_cast %17 : vector<1x8x128xf32> to vector<8x128xf32>
    %19 = vector.broadcast %16 : f32 to vector<8x128xf32>
    %20 = arith.mulf %19, %18 : vector<8x128xf32>
    %21 = arith.addf %14, %20 : vector<8x128xf32>
    %22 = arith.index_cast %arg0 : i32 to index
    %c11 = arith.constant 11 : index
    %23 = memref.load %arg2[%22, %c11] : memref<2x12xf32, #tpu.memory_space<smem>>
    %24 = vector.extract_strided_slice %1 {offsets = [3, 0, 0], sizes = [1, 8, 128], strides = [1, 1, 1]} : vector<4x8x128xf32> to vector<1x8x128xf32>
    %25 = vector.shape_cast %24 : vector<1x8x128xf32> to vector<8x128xf32>
    %26 = vector.broadcast %23 : f32 to vector<8x128xf32>
    %27 = arith.mulf %26, %25 : vector<8x128xf32>
    %28 = arith.addf %21, %27 : vector<8x128xf32>
    %cst = arith.constant 1.000000e-07 : f32
    %29 = vector.broadcast %cst : f32 to vector<8x128xf32>
    %30 = arith.addf %28, %29 : vector<8x128xf32>
    %cst_3 = arith.constant 1.000000e+00 : f32
    %31 = vector.broadcast %cst_3 : f32 to vector<8x128xf32>
    %32 = arith.divf %31, %30 : vector<8x128xf32>
    %33 = arith.index_cast %arg0 : i32 to index
    %c0_4 = arith.constant 0 : index
    %34 = memref.load %arg2[%33, %c0_4] : memref<2x12xf32, #tpu.memory_space<smem>>
    %35 = vector.extract_strided_slice %1 {offsets = [0, 0, 0], sizes = [1, 8, 128], strides = [1, 1, 1]} : vector<4x8x128xf32> to vector<1x8x128xf32>
    %36 = vector.shape_cast %35 : vector<1x8x128xf32> to vector<8x128xf32>
    %37 = vector.broadcast %34 : f32 to vector<8x128xf32>
    %38 = arith.mulf %37, %36 : vector<8x128xf32>
    %39 = arith.index_cast %arg0 : i32 to index
    %c1 = arith.constant 1 : index
    %40 = memref.load %arg2[%39, %c1] : memref<2x12xf32, #tpu.memory_space<smem>>
    %41 = vector.extract_strided_slice %1 {offsets = [1, 0, 0], sizes = [1, 8, 128], strides = [1, 1, 1]} : vector<4x8x128xf32> to vector<1x8x128xf32>
    %42 = vector.shape_cast %41 : vector<1x8x128xf32> to vector<8x128xf32>
    %43 = vector.broadcast %40 : f32 to vector<8x128xf32>
    %44 = arith.mulf %43, %42 : vector<8x128xf32>
    %45 = arith.addf %38, %44 : vector<8x128xf32>
    %46 = arith.index_cast %arg0 : i32 to index
    %c2 = arith.constant 2 : index
    %47 = memref.load %arg2[%46, %c2] : memref<2x12xf32, #tpu.memory_space<smem>>
    %48 = vector.extract_strided_slice %1 {offsets = [2, 0, 0], sizes = [1, 8, 128], strides = [1, 1, 1]} : vector<4x8x128xf32> to vector<1x8x128xf32>
    %49 = vector.shape_cast %48 : vector<1x8x128xf32> to vector<8x128xf32>
    %50 = vector.broadcast %47 : f32 to vector<8x128xf32>
    %51 = arith.mulf %50, %49 : vector<8x128xf32>
    %52 = arith.addf %45, %51 : vector<8x128xf32>
    %53 = arith.index_cast %arg0 : i32 to index
    %c3 = arith.constant 3 : index
    %54 = memref.load %arg2[%53, %c3] : memref<2x12xf32, #tpu.memory_space<smem>>
    %55 = vector.extract_strided_slice %1 {offsets = [3, 0, 0], sizes = [1, 8, 128], strides = [1, 1, 1]} : vector<4x8x128xf32> to vector<1x8x128xf32>
    %56 = vector.shape_cast %55 : vector<1x8x128xf32> to vector<8x128xf32>
    %57 = vector.broadcast %54 : f32 to vector<8x128xf32>
    %58 = arith.mulf %57, %56 : vector<8x128xf32>
    %59 = arith.addf %52, %58 : vector<8x128xf32>
    %60 = arith.mulf %59, %32 : vector<8x128xf32>
    %cst_5 = arith.constant 1.000000e+00 : f32
    %61 = vector.broadcast %cst_5 : f32 to vector<8x128xf32>
    %62 = arith.subf %60, %61 : vector<8x128xf32>
    %c0_6 = arith.constant 0 : index
    %c0_7 = arith.constant 0 : index
    %c0_8 = arith.constant 0 : index
    %c0_9 = arith.constant 0 : index
    %63 = vector.load %arg4[%c0_6, %c0_7, %c0_8, %c0_9] : memref<1x2x8x128xf32, #tpu.memory_space<vmem>>, vector<1x1x8x128xf32>
    %64 = vector.shape_cast %63 : vector<1x1x8x128xf32> to vector<8x128xf32>
    %65 = vector.shape_cast %62 : vector<8x128xf32> to vector<1x1x8x128xf32>
    tpu.vector_store %arg4[%c0_6, %c0_7, %c0_8, %c0_9], %65 {strides = array<i32>} : memref<1x2x8x128xf32, #tpu.memory_space<vmem>>, vector<1x1x8x128xf32>,
    %66 = arith.index_cast %arg0 : i32 to index
    %c4 = arith.constant 4 : index
    %67 = memref.load %arg2[%66, %c4] : memref<2x12xf32, #tpu.memory_space<smem>>
    %68 = vector.extract_strided_slice %1 {offsets = [0, 0, 0], sizes = [1, 8, 128], strides = [1, 1, 1]} : vector<4x8x128xf32> to vector<1x8x128xf32>
    %69 = vector.shape_cast %68 : vector<1x8x128xf32> to vector<8x128xf32>
    %70 = vector.broadcast %67 : f32 to vector<8x128xf32>
    %71 = arith.mulf %70, %69 : vector<8x128xf32>
    %72 = arith.index_cast %arg0 : i32 to index
    %c5 = arith.constant 5 : index
    %73 = memref.load %arg2[%72, %c5] : memref<2x12xf32, #tpu.memory_space<smem>>
    %74 = vector.extract_strided_slice %1 {offsets = [1, 0, 0], sizes = [1, 8, 128], strides = [1, 1, 1]} : vector<4x8x128xf32> to vector<1x8x128xf32>
    %75 = vector.shape_cast %74 : vector<1x8x128xf32> to vector<8x128xf32>
    %76 = vector.broadcast %73 : f32 to vector<8x128xf32>
    %77 = arith.mulf %76, %75 : vector<8x128xf32>
    %78 = arith.addf %71, %77 : vector<8x128xf32>
    %79 = arith.index_cast %arg0 : i32 to index
    %c6 = arith.constant 6 : index
    %80 = memref.load %arg2[%79, %c6] : memref<2x12xf32, #tpu.memory_space<smem>>
    %81 = vector.extract_strided_slice %1 {offsets = [2, 0, 0], sizes = [1, 8, 128], strides = [1, 1, 1]} : vector<4x8x128xf32> to vector<1x8x128xf32>
    %82 = vector.shape_cast %81 : vector<1x8x128xf32> to vector<8x128xf32>
    %83 = vector.broadcast %80 : f32 to vector<8x128xf32>
    %84 = arith.mulf %83, %82 : vector<8x128xf32>
    %85 = arith.addf %78, %84 : vector<8x128xf32>
    %86 = arith.index_cast %arg0 : i32 to index
    %c7 = arith.constant 7 : index
    %87 = memref.load %arg2[%86, %c7] : memref<2x12xf32, #tpu.memory_space<smem>>
    %88 = vector.extract_strided_slice %1 {offsets = [3, 0, 0], sizes = [1, 8, 128], strides = [1, 1, 1]} : vector<4x8x128xf32> to vector<1x8x128xf32>
    %89 = vector.shape_cast %88 : vector<1x8x128xf32> to vector<8x128xf32>
    %90 = vector.broadcast %87 : f32 to vector<8x128xf32>
    %91 = arith.mulf %90, %89 : vector<8x128xf32>
    %92 = arith.addf %85, %91 : vector<8x128xf32>
    %93 = arith.mulf %92, %32 : vector<8x128xf32>
    %cst_10 = arith.constant 1.000000e+00 : f32
    %94 = vector.broadcast %cst_10 : f32 to vector<8x128xf32>
    %95 = arith.subf %93, %94 : vector<8x128xf32>
    %c0_11 = arith.constant 0 : index
    %c1_12 = arith.constant 1 : index
    %c0_13 = arith.constant 0 : index
    %c0_14 = arith.constant 0 : index
    %96 = vector.load %arg4[%c0_11, %c1_12, %c0_13, %c0_14] : memref<1x2x8x128xf32, #tpu.memory_space<vmem>>, vector<1x1x8x128xf32>
    %97 = vector.shape_cast %96 : vector<1x1x8x128xf32> to vector<8x128xf32>
    %98 = vector.shape_cast %95 : vector<8x128xf32> to vector<1x1x8x128xf32>
    tpu.vector_store %arg4[%c0_11, %c1_12, %c0_13, %c0_14], %98 {strides = array<i32>} : memref<1x2x8x128xf32, #tpu.memory_space<vmem>>, vector<1x1x8x128xf32>,
    return
  }
  func.func @transform_0(%arg0: i32, %arg1: i32) -> (i32, i32) {
    %c0_i32 = arith.constant 0 : i32
    %c0_i32_0 = arith.constant 0 : i32
    %c0_i32_1 = arith.constant 0 : i32
    return %c0_i32, %c0_i32_0 : i32, i32
  }
  func.func @transform_1(%arg0: i32, %arg1: i32) -> (i32, i32, i32, i32) {
    %c0_i32 = arith.constant 0 : i32
    %c0_i32_0 = arith.constant 0 : i32
    %c0_i32_1 = arith.constant 0 : i32
    return %arg0, %c0_i32, %arg1, %c0_i32_0 : i32, i32, i32, i32
  }
  func.func @transform_2(%arg0: i32, %arg1: i32) -> (i32, i32, i32, i32) {
    %c0_i32 = arith.constant 0 : i32
    %c0_i32_0 = arith.constant 0 : i32
    %c0_i32_1 = arith.constant 0 : i32
    return %arg0, %c0_i32, %arg1, %c0_i32_0 : i32, i32, i32, i32
  }
}

</mosaic_0001>

<bundles_post_ra>
// kernel: tpu_custom_call.1
= control target key start
LH: loop header
LB: loop body
LE: loop exit
PB: predicated region body
PF: predicated region fallthrough
CT: control target
= control target key end

     0   :  { %s805_s0 = inlined_call_operand.hbm [shape: f32[2,12], index: 0, kind: input, shape index: {}]   ;;  %s806_s1 = inlined_call_operand.hbm [shape: f32[2,4,8,128], index: 1, kind: input, shape index: {}]   ;;  %s807_s2 = inlined_call_operand.hbm [shape: f32[2,2,8,128], index: 2, kind: output, shape index: {}]  }
   0x1   :  { %808 = sst [smem:[#allocation11_spill]] %s805_s0 }
   0x2   :  { %7 = vsyncpa [#allocation5], 0 }
   0x3   :  { %8 = vsyncpa [#allocation3], 0 }
   0x4   :  { %10 = vsyncpa [#allocation3 + $0x1], 0 }
   0x5   :  { %11 = vsyncpa [#allocation4], 0 }
   0x6   :  { %13 = vsyncpa [#allocation4 + $0x1], 0  ;;  %s623_s9 = smov 0   ;;  %s625_s10 = smov 0  }
   0x7   :  { %s627_s11 = smov 0   ;;  %s629_s12 = smov 0  }
   0x8   :  { %s631_s13 = smov 0   ;;  %s633_s14 = smov 0  }
   0x9 LB: > { %s374_s15 = sadd.s32 4294967295, %s599_s14   ;;  %s375_s16 = sadd.s32 4294967294, %s599_s14   ;;  %s599_s14 = sphi %s633_s14, %s19_s14   ;;  %s595_s13 = sphi %s631_s13, %s822_s13   ;;  %s591_s12 = sphi %s629_s12, %s821_s12   ;;  %s587_s11 = sphi %s627_s11, %s820_s11   ;;  %s583_s10 = sphi %s625_s10, %s819_s10   ;;  %s579_s9 = sphi %s623_s9, %s818_s9  }
   0xa   : > { %s61_s17 = sadd.s32 1, %s587_s11  ;;  %p68_p0 = scmp.ne.s32.totalorder %s587_s11, %s583_s10 }
   0xb   : > { %p69_p1 = scmp.eq.s32.totalorder %s599_s14, 0  ;;  %p74_p2 = scmp.ne.s32.totalorder %s583_s10, %s579_s9 }
   0xc   : > { %p661_p3 = scmp.eq.s32.totalorder %s374_s15, 0  ;;  %p100_p4 = scmp.eq.s32.totalorder %s374_s15, 1 }
   0xd   : > { %p70_p5 = por %p69_p1, %p68_p0  ;;  %p106_p6 = scmp.eq.s32.totalorder %s375_s16, 1 }
   0xe   : > { %p667_p7 = por %p661_p3, %p74_p2  ;;  %p671_p8 = por %p100_p4, %p68_p0 }
   0xf   : > { %p675_p9 = por %p106_p6, %p74_p2  ;;  %p376_p10 = scmp.ge.s32.totalorder %s599_s14, 1 }
  0x10   : > { %p113_p11 = scmp.lt.s32.totalorder %s599_s14, 3  ;;  %p418_p1 = scmp.lt.s32.totalorder %s599_s14, 2 }
  0x11   : > { %s812_s21 = scalar_select %p675_p9, 1, 0 }
  0x12   : > { %p682_p13 = pnand %p376_p10, %p113_p11  ;;  %s135_s23 = sand.u32 1, %s587_s11  }
  0x13   : > { %p690_p2 = pnand %p418_p1, %p70_p5  ;;  %s31_s25 = sadd.s32 1, %s595_s13 }
  0x14   : > { %p405_p0 = pneg %p682_p13  ;;  %s379_s26 = sshll.u32 %s135_s23, 5 }
  0x15   : > { %p33_p6 = scmp.ge.s32.totalorder %s31_s25, 2  ;;  %s601_s27 = smov [#allocation2]  }
  0x16   : > { %p406_p4 = pnand %p405_p0, %p661_p3  ;;  %s815_s0 = sld [smem:[#allocation11_spill]] }
  0x17   : > { %s824_s25 = smov (%p33_p6, %s31_s25), 0  ;;  %s395_s30 = sshll.u32 %s595_s13, 9 }
  0x18   : > { %s56_s3 = ssub.s32 %s595_s13, %s824_s25  ;;  %s146_s6 = scalar_lea.hbm %s806_s1, %s395_s30 }
  0x19   : > { %p59_p5 = scmp.eq.s32.totalorder %s56_s3, 0  ;;  %s139_s7 = scalar_lea.vmem [#allocation6], %s379_s26 }
  0x1a   : > { %s147_s8 = sshll.u32 %s139_s7, 4  ;;  %s136_s16 = scalar_lea.sflag [#allocation3], %s135_s23  ;;  %s148_s8 = int_to_ptr.vmem [resolvable:$true] %s147_s8 }
  0x1b   : > { %s711_s15 = scalar_select %p59_p5, %s587_s11, %s61_s17  }
  0x1c   : > { %408 = dma.hbm_to_smem (!%p406_p4), %s815_s0, 32, %s601_s27, [#allocation5]  }
  0x1d   : > { %p489_p10 = pneg %p690_p2  ;;  %s500_s27 = scalar_lea.vmem %s148_s8, 512 }
  0x1e   : > { %p501_p11 = scmp.ne.s32.totalorder %s148_s8, %s500_s27  ;;  %s602_s28 = smov [#allocation6]  }
  0x1f   : > { %s505_s29 = sshll.u32 %s602_s28, 4  ;;  %s506_s29 = int_to_ptr.vmem [resolvable:$false] %s505_s29 }
  0x20   : > { %p503_p1 = pnand %p501_p11, %p489_p10  ;;  %s507_s0 = scalar_lea.vmem %s506_s29, 1024 }
  0x21   : > { %p508_p4 = scmp.lt.s32.totalorder %s148_s8, %s506_s29  ;;  %p509_p6 = scmp.lt.s32.totalorder %s507_s0, %s500_s27 }
  0x22   : > { %p504_p0 = pneg %p503_p1 }
  0x23   : > { %p510_p12 = por %p509_p6, %p508_p4 }
  0x25   : > { %p511_p9 = pnand %p510_p12, %p504_p0 }
  0x27   : > { %514 = shalt.err (!%p511_p9)
}
  0x28   : > { %s603_s26 = smov 128   ;;  %s604_s17 = smov 8  }
  0x29   : > { %412 = dma.hbm_to_vmem [thread:$0]  (!%p690_p2), %s146_s6, 512, %s148_s8, %s136_s16, %s603_s26, %s603_s26, %s604_s17  }
  0x2a   : > { %159 = sbr.rel (%p682_p13) target bundleno = 106 (0x6a), region = 28 }
  0x2f   : > { %566 = dma.done.wait (%p661_p3), [#allocation5], 32  }
  0x30   : > { %568 = vsyncadd (%p661_p3), [#allocation5], 4294967264  ;;  %s724_s0 = sand.u32 1, %s583_s10  }
  0x31   : > { %s384_s23 = sshll.u32 %s724_s0, 5  ;;  %s166_s30 = scalar_lea.sflag [#allocation3], %s724_s0 }
  0x32   : > { %s169_s3 = scalar_lea.vmem [#allocation6], %s384_s23 }
  0x33   : > { %570 = dma.done.wait (%p667_p7), %s166_s30, 512  }
  0x34   : > { %572 = vsyncadd (%p667_p7), %s166_s30, 4294966784 }
  0x35   : > { %174 = sfence }
  0x36   : > { %s733_s22 = sshll.u32 %s591_s12, 7  ;;  %v191_v0 = vld [vmem:[%s169_s3] sm:$0xff]  ;;  %v192_v1 = vld [vmem:[%s169_s3 + $0x8] sm:$0xff]  ;;  %v193_v2 = vld [vmem:[%s169_s3 + $0x10] sm:$0xff] }
  0x37   : > { %s196_s18 = sadd.s32 8, %s733_s22  ;;  %s200_s4 = sadd.s32 9, %s733_s22  ;;  %v194_v4 = vld [vmem:[%s169_s3 + $0x18] sm:$0xff] }
  0x38   : > { %s197_s24 = sld [smem:[#allocation2 + %s196_s18]]  ;;  %s205_s6 = sadd.s32 10, %s733_s22 }
  0x39   : > { %s201_s5 = sld [smem:[#allocation2 + %s200_s4]]  ;;  %s210_s19 = sadd.s32 11, %s733_s22 }
  0x3a   : > { %s206_s7 = sld [smem:[#allocation2 + %s205_s6]]  ;;  %s221_s16 = sadd.s32 1, %s733_s22 }
  0x3b   : > { %s211_s8 = sld [smem:[#allocation2 + %s210_s19]]  ;;  %s226_s28 = sadd.s32 2, %s733_s22 }
  0x3c   : > { %s218_s27 = sld [smem:[#allocation2 + %s733_s22]]  ;;  %s231_s17 = sadd.s32 3, %s733_s22 }
  0x3d   : > { %s222_s29 = sld [smem:[#allocation2 + %s221_s16]]  ;;  %s239_s23 = sadd.s32 4, %s733_s22 }
  0x3e   : > { %v198_v3 = vstv %s197_s24  ;;  %s742_s26 = sld [smem:[#allocation2 + %s226_s28]]  ;;  %s243_s30 = sadd.s32 5, %s733_s22 }
  0x3f   : > { %v199_v5 = vmul.f32 %v198_v3, %v191_v0  ;;  %v202_v6 = vstv %s201_s5  ;;  %s240_s18 = sld [smem:[#allocation2 + %s239_s23]]  ;;  %s248_s4 = sadd.s32 6, %s733_s22 }
  0x40   : > { %v203_v7 = vmul.f32 %v202_v6, %v192_v1  ;;  %v207_v8 = vstv %s206_s7  ;;  %s244_s6 = sld [smem:[#allocation2 + %s243_s30]]  ;;  %s253_s24 = sadd.s32 7, %s733_s22 }
  0x41   : > { %v208_v9 = vmul.f32 %v207_v8, %v193_v2  ;;  %v212_v10 = vstv %s211_s8  ;;  %s249_s3 = sld [smem:[#allocation2 + %s248_s4]]  ;;  %s385_s22 = sshll.u32 %s724_s0, 4 }
  0x42   : > { %v204_v11 = vadd.f32 %v203_v7, %v199_v5  ;;  %v213_v12 = vmul.f32 %v212_v10, %v194_v4  ;;  %v219_v14 = vstv %s218_s27  ;;  %s232_s5 = sld [smem:[#allocation2 + %s231_s17]]  ;;  %s190_s7 = scalar_lea.vmem [#allocation7], %s385_s22 }
  0x43   : > { %v223_v15 = vstv %s222_s29  ;;  %s254_s19 = sld [smem:[#allocation2 + %s253_s24]]  ;;  %v220_v17 = vmul.f32 %v219_v14, %v191_v0  ;;  %s277_s8 = sshll.u32 %s190_s7, 4  ;;  %s752_s8 = int_to_ptr.vmem [resolvable:$true] %s277_s8 }
  0x44   : > { %v209_v13 = vadd.f32 %v208_v9, %v204_v11  ;;  %v224_v20 = vmul.f32 %v223_v15, %v192_v1  ;;  %v228_v23 = vstv %s742_s26  ;;  %s396_s16 = sshll.u32 %s591_s12, 8  ;;  %s263_s26 = scalar_lea.sflag [#allocation4], %s724_s0 }
  0x45   : > { %v241_v18 = vstv %s240_s18  ;;  %v229_v27 = vmul.f32 %v228_v23, %v193_v2  ;;  %s757_s29 = scalar_lea.hbm %s807_s2, %s396_s16  ;;  %s515_s17 = scalar_lea.vmem %s752_s8, 256 }
  0x46   : > { %v214_v16 = vadd.f32 %v213_v12, %v209_v13  ;;  %v242_v21 = vmul.f32 %v241_v18, %v191_v0  ;;  %v245_v22 = vstv %s244_s6  ;;  %v225_v26 = vadd.f32 %v224_v20, %v220_v17  ;;  %p516_p3 = scmp.ne.s32.totalorder %s752_s8, %s515_s17  ;;  %s605_s12 = smov [#allocation7]  }
  0x47   : > { %v246_v24 = vmul.f32 %v245_v22, %v192_v1  ;;  %v250_v25 = vstv %s249_s3  ;;  %s519_s23 = sshll.u32 %s605_s12, 4  ;;  %s520_s23 = int_to_ptr.vmem [resolvable:$false] %s519_s23 }
  0x48   : > { %v215_v19 = vadd.f32 1e-07, %v214_v16  ;;  %v251_v29 = vmul.f32 %v250_v25, %v193_v2  ;;  %v233_v30 = vstv %s232_s5  ;;  %v230_v32 = vadd.f32 %v229_v27, %v225_v26  ;;  %p517_p7 = pnand %p516_p3, %p671_p8  ;;  %s521_s30 = scalar_lea.vmem %s520_s23, 512 }
  0x49   : > { %v247_v28 = vadd.f32 %v246_v24, %v242_v21  ;;  %v255_v31 = vstv %s254_s19  ;;  %v234_v33 = vmul.f32 %v233_v30, %v194_v4  ;;  %p522_p12 = scmp.lt.s32.totalorder %s752_s8, %s520_s23  ;;  %p523_p13 = scmp.lt.s32.totalorder %s521_s30, %s515_s17 }
  0x4a   : > { %474 = vrcp.f32 %v215_v19  ;;  %v256_v35 = vmul.f32 %v255_v31, %v194_v4  ;;  %p518_p9 = pneg %p517_p7 }
  0x4b   : > { %v252_v34 = vadd.f32 %v251_v29, %v247_v28  ;;  %v235_v36 = vadd.f32 %v234_v33, %v230_v32  ;;  %p524_p2 = por %p523_p13, %p522_p12 }
  0x4d   : > { %v257_v37 = vadd.f32 %v256_v35, %v252_v34  ;;  %p525_p5 = pnand %p524_p2, %p518_p9 }
  0x57   : > { %v475_v38 = vpop.eup %474 }
  0x58   : > { %v236_v39 = vmul.f32 %v475_v38, %v235_v36  ;;  %v258_v40 = vmul.f32 %v475_v38, %v257_v37 }
  0x5a   : > { %v387_v41 = vadd.f32 -1.0, %v236_v39  ;;  %v388_v42 = vadd.f32 -1.0, %v258_v40 }
  0x5c   : > { %238 = vst [vmem:[%s190_s7] sm:$0xff] %v387_v41  ;;  %389 = vst [vmem:[%s190_s7 + $0x8] sm:$0xff] %v388_v42 }
  0x5d   : > { %528 = shalt.err (!%p525_p5)
}
  0x5e   : > { %s529_s18 = scalar_lea.hbm %s757_s29, 256  ;;  %s533_s24 = scalar_lea.hbm %s807_s2, 512 }
  0x5f   : > { %p530_p10 = scmp.ne.s32.totalorder %s757_s29, %s529_s18  ;;  %p534_p0 = scmp.lt.s32.totalorder %s757_s29, %s807_s2 }
  0x60   : > { %p535_p4 = scmp.lt.s32.totalorder %s533_s24, %s529_s18 }
  0x61   : > { %p531_p11 = pnand %p530_p10, %p671_p8 }
  0x62   : > { %p536_p6 = por %p535_p4, %p534_p0 }
  0x63   : > { %p532_p1 = pneg %p531_p11 }
  0x65   : > { %p537_p3 = pnand %p536_p6, %p532_p1 }
  0x67   : > { %540 = shalt.err (!%p537_p3)
}
  0x68   : > { %s606_s19 = smov 128   ;;  %s607_s22 = smov 8  }
  0x69   : > { %403 = dma.vmem_to_hbm [thread:$0]  (%p671_p8), %s752_s8, 256, %s757_s29, %s263_s26, %s606_s19, %s606_s19, %s607_s22  }
  0x6a PF: > { %s292_s7 = sand.u32 1, %s579_s9   ;;  %p816_p7 = scmp.ne.s32.totalorder %s812_s21, 0 }
  0x6b   : > { %p817_p9 = scmp.ge.s32.totalorder %s599_s14, 2  ;;  %s293_s16 = scalar_lea.sflag [#allocation4], %s292_s7 }
  0x6d   : > { %p414_p12 = pnand %p817_p9, %p816_p7 }
  0x6f   : > { %p415_p13 = pneg %p414_p12 }
  0x71   : > { %574 = dma.done.wait (%p415_p13), %s293_s16, 256  }
  0x72   : > { %576 = vsyncadd (%p415_p13), %s293_s16, 4294967040  ;;  %s19_s14 = sadd.s32 1, %s599_s14   ;;  %s818_s9 = smov %s583_s10 }
  0x73   : > { %p16_p2 = scmp.ge.s32.totalorder %s19_s14, 4   ;;  %s819_s10 = smov %s587_s11 }
  0x74   : > { %s820_s11 = smov %s711_s15  ;;  %s821_s12 = smov %s595_s13 }
  0x75   : > { %s822_s13 = smov %s824_s25  ;;  %18 = sbr.rel (!%p16_p2) target bundleno = 9 (0x9), region = 79 }
  0x7a   :  { %298 = vsyncpa [#allocation3], 1 }
  0x7b   :  { %300 = vsyncpa [#allocation3 + $0x1], 1 }
  0x7c   :  { %301 = vsyncpa [#allocation4], 1 }
  0x7d   :  { %303 = vsyncpa [#allocation4 + $0x1], 1 }
  0x7e   :  { %304 = vsyncpa [#allocation5], 1 }
  0x7f   :  { %306 = vsyncpa [#allocation5 + $0x1], 1 }

</bundles_post_ra>
